<compile_context>
chip_gen: v7x
topology: tpu7x:2x2x1
jax: 0.10.0
libtpu: 0.0.40
codegen_flags: <defaults>
</compile_context>

<pallas_src>
import functools

import jax
import jax.numpy as jnp
from jax.experimental import pallas as pl
from jax.experimental.pallas import tpu as pltpu

H1 = 256   # hidden dim of first Linear
H2 = 128   # output dim of second Linear


def _round_up(v, m):
    return (v + m - 1) // m * m


def _prenet_kernel(x_ref, w0_ref, b0_ref, w1_ref, b1_ref, o_ref):
    # Layer 1: Linear -> ReLU (dropout is eval-mode identity).
    # bf16 MXU inputs, f32 accumulation.
    x = x_ref[...].astype(jnp.bfloat16)
    h = jnp.dot(x, w0_ref[...], preferred_element_type=jnp.float32)
    h = jnp.maximum(h + b0_ref[...], 0.0)
    # Layer 2: Linear -> ReLU.
    o = jnp.dot(h.astype(jnp.bfloat16), w1_ref[...],
                preferred_element_type=jnp.float32)
    o_ref[...] = jnp.maximum(o + b1_ref[...], 0.0).astype(o_ref.dtype)


def _vmem_limit_bytes(tm, K, out_itemsize):
    """Actual per-step VMEM footprint, with ~2x headroom, clamped to 16-48 MiB."""
    x_b = 2 * tm * K * 4                                   # double-buffered x tile (f32)
    o_b = 2 * tm * H2 * out_itemsize                       # double-buffered out tile
    h_b = tm * H1 * (4 + 2)                                # f32 intermediate + bf16 copy
    w_b = 2 * ((K * H1 + H1 * H2) * 2 + (H1 + H2) * 4)     # weights (bf16) + biases (f32)
    need = x_b + o_b + h_b + w_b
    return int(min(max(2 * need, 16 * 1024 * 1024), 48 * 1024 * 1024))


@functools.partial(jax.jit, static_argnames=("tm",))
def prenet_forward(x, prepared, tm=2048):
    """x: (B, L, in_dim) -> (B, L, 128); eval-mode Prenet forward."""
    B, L, in_dim = x.shape
    w0_t, b0_r = prepared["w0_t"], prepared["b0_r"]   # (in_dim, 256) bf16, (1, 256) f32
    w1_t, b1_r = prepared["w1_t"], prepared["b1_r"]   # (256, 128)   bf16, (1, 128) f32

    M = B * L
    x2 = x.reshape(M, in_dim)          # contiguous reshape, no copy
    out_dtype = x.dtype                # emit in the caller's dtype

    # Row tile: <= tm, multiple of 8, clamped for tiny M; for large M shrink so the
    # grid keeps >=4 steps (2 per v7x TensorCore) without dropping below 512 rows.
    tm = _round_up(max(8, min(tm, _round_up(M, 8))), 8)
    while tm >= 1024 and (M + tm - 1) // tm < 4:
        tm //= 2
    grid = (pl.cdiv(M, tm),)

    out = pl.pallas_call(
        _prenet_kernel,
        out_shape=jax.ShapeDtypeStruct((M, H2), out_dtype),
        grid_spec=pltpu.PrefetchScalarGridSpec(
            num_scalar_prefetch=0,
            grid=grid,
            in_specs=[
                # Last dim equals the full array extent, so arbitrary in_dim is legal
                # without padding the contraction axis.
                pl.BlockSpec((tm, in_dim), lambda i: (i, 0)),   # activation row tile
                pl.BlockSpec((in_dim, H1), lambda i: (0, 0)),   # W0^T (resident, bf16)
                pl.BlockSpec((1, H1), lambda i: (0, 0)),        # b0
                pl.BlockSpec((H1, H2), lambda i: (0, 0)),       # W1^T (resident, bf16)
                pl.BlockSpec((1, H2), lambda i: (0, 0)),        # b1
            ],
            out_specs=pl.BlockSpec((tm, H2), lambda i: (i, 0)),
        ),
        compiler_params=pltpu.CompilerParams(
            dimension_semantics=("parallel",),
            vmem_limit_bytes=_vmem_limit_bytes(
                tm, in_dim, jnp.dtype(out_dtype).itemsize),
        ),
    )(x2, w0_t, b0_r, w1_t, b1_r)

    return out.reshape(B, L, H2)


def prepare_params(params):
    """One-time conversion of PyTorch-layout params to the kernel layout (no per-call copies)."""
    return {
        "w0_t": jnp.asarray(params["w0"], jnp.float32).T.astype(jnp.bfloat16),
        "b0_r": jnp.asarray(params["b0"], jnp.float32).reshape(1, H1),
        "w1_t": jnp.asarray(params["w1"], jnp.float32).T.astype(jnp.bfloat16),
        "b1_r": jnp.asarray(params["b1"], jnp.float32).reshape(1, H2),
    }


def init_params(in_dim, key):
    k0, k1, k2, k3 = jax.random.split(key, 4)
    scale = 0.05
    return {
        "w0": (scale * jax.random.normal(k0, (H1, in_dim))).astype(jnp.float32),
        "b0": (scale * jax.random.normal(k1, (H1,))).astype(jnp.float32),
        "w1": (scale * jax.random.normal(k2, (H2, H1))).astype(jnp.float32),
        "b1": (scale * jax.random.normal(k3, (H2,))).astype(jnp.float32),
    }


def prenet_reference(x, p):
    """Pure-JAX f32 reference of the eval-mode PyTorch forward (for validation)."""
    h = jnp.maximum(jnp.einsum("blk,ok->blo", x, p["w0"]) + p["b0"], 0.0)
    return jnp.maximum(jnp.einsum("blk,ok->blo", h, p["w1"]) + p["b1"], 0.0)


if __name__ == "__main__":
    B, L, IN = 2, 8, 256
    key = jax.random.PRNGKey(0)
    kx, kp = jax.random.split(key)
    x = jax.random.normal(kx, (B, L, IN), dtype=jnp.float32)
    params = init_params(IN, kp)
    prepared = prepare_params(params)   # one-time weight transpose + bf16 cast

    y = prenet_forward(x, prepared)
    y = jax.block_until_ready(y)

    assert y.shape == (B, L, H2), y.shape
    assert y.dtype == jnp.float32
    assert bool(jnp.all(jnp.isfinite(y)))

    # bf16 MXU inputs with f32 accumulation -> loosen tolerance vs the f32 reference.
    y_ref = prenet_reference(x, params)
    assert bool(jnp.allclose(y, y_ref, atol=2e-2, rtol=2e-2)), (
        float(jnp.max(jnp.abs(y - y_ref))))

    print("KERNEL_OK")
</pallas_src>

<mosaic_0001>
module attributes {stable_mosaic.version = 11 : i64} {
  func.func @_prenet_kernel(%arg0: i32, %arg1: memref<16x256xf32, #tpu.memory_space<vmem>>, %arg2: memref<256x256xbf16, #tpu.memory_space<vmem>>, %arg3: memref<1x256xf32, #tpu.memory_space<vmem>>, %arg4: memref<256x128xbf16, #tpu.memory_space<vmem>>, %arg5: memref<1x128xf32, #tpu.memory_space<vmem>>, %arg6: memref<16x128xf32, #tpu.memory_space<vmem>>) attributes {dimension_semantics = [#tpu.dimension_semantics<parallel>], iteration_bounds = array<i64: 1>, scalar_prefetch = 0 : i64, scratch_operands = 0 : i64, tpu.core_type = #tpu.core_type<tc>, window_params = [{transform_indices = @transform_0, window_bounds = array<i64: 16, 256>}, {pipeline_mode = #tpu.pipeline_mode<synchronous>, transform_indices = @transform_1, window_bounds = array<i64: 256, 256>}, {pipeline_mode = #tpu.pipeline_mode<synchronous>, transform_indices = @transform_2, window_bounds = array<i64: 1, 256>}, {pipeline_mode = #tpu.pipeline_mode<synchronous>, transform_indices = @transform_3, window_bounds = array<i64: 256, 128>}, {pipeline_mode = #tpu.pipeline_mode<synchronous>, transform_indices = @transform_4, window_bounds = array<i64: 1, 128>}, {transform_indices = @transform_5, window_bounds = array<i64: 16, 128>}]} {
    %c0 = arith.constant 0 : index
    %c0_0 = arith.constant 0 : index
    %0 = vector.load %arg1[%c0, %c0_0] : memref<16x256xf32, #tpu.memory_space<vmem>>, vector<16x256xf32>
    %1 = arith.truncf %0 : vector<16x256xf32> to vector<16x256xbf16>
    %c0_1 = arith.constant 0 : index
    %c0_2 = arith.constant 0 : index
    %2 = vector.load %arg2[%c0_1, %c0_2] : memref<256x256xbf16, #tpu.memory_space<vmem>>, vector<256x256xbf16>
    %cst = arith.constant dense<0.000000e+00> : vector<16x256xf32>
    %3 = tpu.matmul %1, %2, %cst {dimension_numbers = #tpu.dot_dimension_numbers<[1], [0], [0], [1], [0, 0, 1, 1], [], []>} : vector<16x256xbf16>, vector<256x256xbf16>, vector<16x256xf32> -> vector<16x256xf32>
    %c0_3 = arith.constant 0 : index
    %c0_4 = arith.constant 0 : index
    %4 = vector.load %arg3[%c0_3, %c0_4] : memref<1x256xf32, #tpu.memory_space<vmem>>, vector<1x256xf32>
    %5 = vector.broadcast %4 : vector<1x256xf32> to vector<16x256xf32>
    %6 = arith.addf %3, %5 : vector<16x256xf32>
    %cst_5 = arith.constant 0.000000e+00 : f32
    %7 = vector.broadcast %cst_5 : f32 to vector<16x256xf32>
    %8 = arith.maximumf %6, %7 : vector<16x256xf32>
    %9 = arith.truncf %8 : vector<16x256xf32> to vector<16x256xbf16>
    %c0_6 = arith.constant 0 : index
    %c0_7 = arith.constant 0 : index
    %10 = vector.load %arg4[%c0_6, %c0_7] : memref<256x128xbf16, #tpu.memory_space<vmem>>, vector<256x128xbf16>
    %cst_8 = arith.constant dense<0.000000e+00> : vector<16x128xf32>
    %11 = tpu.matmul %9, %10, %cst_8 {dimension_numbers = #tpu.dot_dimension_numbers<[1], [0], [0], [1], [0, 0, 1, 1], [], []>} : vector<16x256xbf16>, vector<256x128xbf16>, vector<16x128xf32> -> vector<16x128xf32>
    %c0_9 = arith.constant 0 : index
    %c0_10 = arith.constant 0 : index
    %12 = vector.load %arg5[%c0_9, %c0_10] : memref<1x128xf32, #tpu.memory_space<vmem>>, vector<1x128xf32>
    %13 = vector.broadcast %12 : vector<1x128xf32> to vector<16x128xf32>
    %14 = arith.addf %11, %13 : vector<16x128xf32>
    %cst_11 = arith.constant 0.000000e+00 : f32
    %15 = vector.broadcast %cst_11 : f32 to vector<16x128xf32>
    %16 = arith.maximumf %14, %15 : vector<16x128xf32>
    %c0_12 = arith.constant 0 : index
    %c0_13 = arith.constant 0 : index
    %17 = vector.load %arg6[%c0_12, %c0_13] : memref<16x128xf32, #tpu.memory_space<vmem>>, vector<16x128xf32>
    tpu.vector_store %arg6[%c0_12, %c0_13], %16 {strides = array<i32>} : memref<16x128xf32, #tpu.memory_space<vmem>>, vector<16x128xf32>,
    return
  }
  func.func @transform_0(%arg0: i32) -> (i32, i32) {
    %c0_i32 = arith.constant 0 : i32
    %c0_i32_0 = arith.constant 0 : i32
    return %arg0, %c0_i32 : i32, i32
  }
  func.func @transform_1(%arg0: i32) -> (i32, i32) {
    %c0_i32 = arith.constant 0 : i32
    %c0_i32_0 = arith.constant 0 : i32
    %c0_i32_1 = arith.constant 0 : i32
    return %c0_i32, %c0_i32_0 : i32, i32
  }
  func.func @transform_2(%arg0: i32) -> (i32, i32) {
    %c0_i32 = arith.constant 0 : i32
    %c0_i32_0 = arith.constant 0 : i32
    %c0_i32_1 = arith.constant 0 : i32
    return %c0_i32, %c0_i32_0 : i32, i32
  }
  func.func @transform_3(%arg0: i32) -> (i32, i32) {
    %c0_i32 = arith.constant 0 : i32
    %c0_i32_0 = arith.constant 0 : i32
    %c0_i32_1 = arith.constant 0 : i32
    return %c0_i32, %c0_i32_0 : i32, i32
  }
  func.func @transform_4(%arg0: i32) -> (i32, i32) {
    %c0_i32 = arith.constant 0 : i32
    %c0_i32_0 = arith.constant 0 : i32
    %c0_i32_1 = arith.constant 0 : i32
    return %c0_i32, %c0_i32_0 : i32, i32
  }
  func.func @transform_5(%arg0: i32) -> (i32, i32) {
    %c0_i32 = arith.constant 0 : i32
    %c0_i32_0 = arith.constant 0 : i32
    return %arg0, %c0_i32 : i32, i32
  }
}

</mosaic_0001>

<bundles_post_ra>
// kernel: prenet_forward.1
= control target key start
LH: loop header
LB: loop body
LE: loop exit
PB: predicated region body
PF: predicated region fallthrough
CT: control target
= control target key end

     0   :  { %10 = vsyncpa [#allocation3], 0  ;;  %s859_s0 = inlined_call_operand.hbm [shape: f32[16,256], index: 0, kind: input, shape index: {}]   ;;  %s860_s1 = inlined_call_operand.hbm [shape: bf16[256,256], index: 1, kind: input, shape index: {}]   ;;  %s861_s2 = inlined_call_operand.vmem [shape: f32[1,256], index: 2, kind: input, shape index: {}]   ;;  %s862_s3 = inlined_call_operand.hbm [shape: bf16[256,128], index: 3, kind: input, shape index: {}]   ;;  %s863_s4 = inlined_call_operand.vmem [shape: f32[1,128], index: 4, kind: input, shape index: {}]   ;;  %s864_s5 = inlined_call_operand.hbm [shape: f32[16,128], index: 5, kind: output, shape index: {}]  }
   0x1   :  { %11 = vsyncpa [#allocation6], 0 }
   0x2   :  { %12 = vsyncpa [#allocation4], 0  ;;  %s759_s18 = smov [#allocation5]   ;;  %s665_s22 = scalar_lea.hbm %s860_s1, 4096 }
   0x3   :  { %s30_s19 = sshll.u32 %s759_s18, 4  ;;  %p666_p0 = scmp.ne.s32.totalorder %s860_s1, %s665_s22  ;;  %s31_s19 = int_to_ptr.vmem [resolvable:$true] %s30_s19 }
   0x4   :  { %p669_p1 = scmp.lt.u32.totalorder %s665_s22, %s860_s1 }
   0x6   :  { %p671_p2 = pnand %p669_p1, %p666_p0 }
   0x8   :  { %674 = shalt.err (!%p671_p2)
}
   0x9   :  { %s675_s27 = scalar_lea.vmem %s31_s19, 4096  ;;  %p680_p4 = scmp.lt.s32.totalorder %s31_s19, %s31_s19 }
   0xa   :  { %p676_p3 = scmp.ne.s32.totalorder %s31_s19, %s675_s27  ;;  %p681_p5 = scmp.lt.s32.totalorder %s675_s27, %s675_s27 }
   0xc   :  { %p682_p6 = por %p681_p5, %p680_p4 }
   0xe   :  { %p683_p7 = pnand %p682_p6, %p676_p3 }
  0x10   :  { %686 = shalt.err (!%p683_p7)
}
  0x11   :  { %s760_s28 = smov 128   ;;  %s761_s29 = smov 8  }
  0x12   :  { %36 = dma.hbm_to_vmem [thread:$0]  %s860_s1, 4096, %s31_s19, [#allocation6], %s760_s28, %s760_s28, %s761_s29  }
  0x13   :  { %s762_s7 = smov [#allocation2]   ;;  %s687_s11 = scalar_lea.hbm %s859_s0, 512 }
  0x14   :  { %s18_s8 = sshll.u32 %s762_s7, 4  ;;  %p688_p8 = scmp.ne.s32.totalorder %s859_s0, %s687_s11  ;;  %s19_s8 = int_to_ptr.vmem [resolvable:$true] %s18_s8 }
  0x15   :  { %p691_p9 = scmp.lt.u32.totalorder %s687_s11, %s859_s0 }
  0x17   :  { %p693_p10 = pnand %p691_p9, %p688_p8 }
  0x19   :  { %696 = shalt.err (!%p693_p10)
}
  0x1a   :  { %s697_s16 = scalar_lea.vmem %s19_s8, 512  ;;  %p702_p12 = scmp.lt.s32.totalorder %s19_s8, %s19_s8 }
  0x1b   :  { %p698_p11 = scmp.ne.s32.totalorder %s19_s8, %s697_s16  ;;  %p703_p13 = scmp.lt.s32.totalorder %s697_s16, %s697_s16 }
  0x1d   :  { %p704_p0 = por %p703_p13, %p702_p12 }
  0x1f   :  { %p705_p1 = pnand %p704_p0, %p698_p11 }
  0x21   :  { %708 = shalt.err (!%p705_p1)
}
  0x22   :  { %s763_s1 = smov 256   ;;  %s764_s17 = smov 16  }
  0x23   :  { %24 = dma.hbm_to_vmem [thread:$0]  %s859_s0, 512, %s19_s8, [#allocation3], %s763_s1, %s763_s1, %s764_s17  }
  0x24   :  { %s765_s20 = smov [#allocation7]   ;;  %s709_s24 = scalar_lea.hbm %s862_s3, 2048 }
  0x25   :  { %s44_s21 = sshll.u32 %s765_s20, 4  ;;  %p710_p2 = scmp.ne.s32.totalorder %s862_s3, %s709_s24  ;;  %s45_s21 = int_to_ptr.vmem [resolvable:$true] %s44_s21 }
  0x26   :  { %p713_p3 = scmp.lt.u32.totalorder %s709_s24, %s862_s3 }
  0x28   :  { %p715_p4 = pnand %p713_p3, %p710_p2 }
  0x2a   :  { %718 = shalt.err (!%p715_p4)
}
  0x2b   :  { %s719_s6 = scalar_lea.vmem %s45_s21, 2048  ;;  %p724_p6 = scmp.lt.s32.totalorder %s45_s21, %s45_s21 }
  0x2c   :  { %p720_p5 = scmp.ne.s32.totalorder %s45_s21, %s719_s6  ;;  %p725_p7 = scmp.lt.s32.totalorder %s719_s6, %s719_s6 }
  0x2e   :  { %p726_p8 = por %p725_p7, %p724_p6 }
  0x30   :  { %p727_p9 = pnand %p726_p8, %p720_p5 }
  0x32   :  { %730 = shalt.err (!%p727_p9)
}
  0x33   :  { %s766_s0 = smov 64   ;;  %s767_s7 = smov 4  }
  0x34   :  { %50 = dma.hbm_to_vmem [thread:$0]  %s862_s3, 2048, %s45_s21, [#allocation6], %s766_s0, %s766_s0, %s767_s7  }
  0x35   :  { %753 = dma.done.wait [#allocation3], 512  }
  0x36   :  { %754 = vsyncadd [#allocation3], 4294966784 }
  0x37   :  { %755 = dma.done.wait [#allocation6], 6144  }
  0x38   :  { %756 = vsyncadd [#allocation6], 4294961152  ;;  %v601_v0 = vld [vmem:[#allocation5 + $0x4] ss:$8 sps:$4 sm:$0xff]   ;;  %v603_v1 = vld [vmem:[#allocation5] ss:$8 sps:$4 sm:$0xff]   ;;  %v103_v54 = vlaneseq }
  0x39   :  { %273 = vmatprep.subr.bf16.mxu0 %v601_v0  ;;  %v604_v2 = vld [vmem:[#allocation5 + $0x14] ss:$8 sps:$4 sm:$0xff]   ;;  %v606_v3 = vld [vmem:[#allocation5 + $0x10] ss:$8 sps:$4 sm:$0xff]   ;;  %v607_v4 = vld [vmem:[#allocation5 + $0x24] ss:$8 sps:$4 sm:$0xff]  }
  0x3a   :  { %274 = vmatpush1.bf16.msra.mxu0 %v603_v1  ;;  %v609_v5 = vld [vmem:[#allocation5 + $0x20] ss:$8 sps:$4 sm:$0xff]   ;;  %v610_v6 = vld [vmem:[#allocation5 + $0x34] ss:$8 sps:$4 sm:$0xff]   ;;  %v612_v7 = vld [vmem:[#allocation5 + $0x30] ss:$8 sps:$4 sm:$0xff]  }
  0x3b   :  { %275 = vmatprep.subr.bf16.mxu0 %v604_v2  ;;  %v613_v8 = vld [vmem:[#allocation5 + $0x44] ss:$8 sps:$4 sm:$0xff]   ;;  %v615_v9 = vld [vmem:[#allocation5 + $0x40] ss:$8 sps:$4 sm:$0xff]   ;;  %v616_v10 = vld [vmem:[#allocation5 + $0x54] ss:$8 sps:$4 sm:$0xff]  }
  0x3c   :  { %v618_v11 = vld [vmem:[#allocation5 + $0x50] ss:$8 sps:$4 sm:$0xff]   ;;  %v619_v12 = vld [vmem:[#allocation5 + $0x64] ss:$8 sps:$4 sm:$0xff]   ;;  %v621_v15 = vld [vmem:[#allocation5 + $0x60] ss:$8 sps:$4 sm:$0xff]  }
  0x3d   :  { %v64_v13 = vld [vmem:[#allocation2 + $0x8] sm:$0xff]  ;;  %v66_v14 = vld [vmem:[#allocation2 + $0x18] sm:$0xff]  ;;  %v649_v18 = vld [vmem:[#allocation7 + $0x40] sm:$0xff]   ;;  %v104_v55 = vshrl.u32 %v103_v54, 7  ;;  %s768_s12 = smov [#allocation8]  }
  0x3e   :  { %276 = vmatpush1.bf16.msra.mxu0 %v606_v3  ;;  %v622_v16 = vld [vmem:[#allocation5 + $0x74] ss:$8 sps:$4 sm:$0xff]   ;;  %v68_v17 = vpack.c.bf16 %v66_v14, %v64_v13  ;;  %v650_v19 = vld [vmem:[#allocation7] sm:$0xff]   ;;  %v624_v20 = vld [vmem:[#allocation5 + $0x70] ss:$8 sps:$4 sm:$0xff]   ;;  %569 = vmatprep.subr.bf16.mxu1 %v649_v18  ;;  %s507_s13 = sshll.u32 %s768_s12, 4  ;;  %s508_s13 = int_to_ptr.vmem [resolvable:$true] %s507_s13 }
  0x3f   :  { %277 = vmatprep.subr.bf16.mxu0 %v607_v4  ;;  %v651_v21 = vld [vmem:[#allocation7 + $0x48] sm:$0xff]   ;;  %570 = vmatpush3.bf16.msra.mxu1 %v650_v19  ;;  %v653_v23 = vld [vmem:[#allocation7 + $0x50] sm:$0xff]   ;;  %v655_v27 = vld [vmem:[#allocation7 + $0x58] sm:$0xff]   ;;  %v105_v56 = vsub.s32 0, %v104_v55  ;;  %v109_v58 = vsub.s32 1, %v104_v55  ;;  %s731_s14 = scalar_lea.vmem %s508_s13, 256  ;;  %p736_p11 = scmp.lt.s32.totalorder %s508_s13, %s508_s13 }
  0x40   :  { %305 = vmatprep.mubr.bf16.mxu0 %v68_v17  ;;  %v652_v22 = vld [vmem:[#allocation7 + $0x8] sm:$0xff]   ;;  %571 = vmatprep.subr.bf16.mxu1 %v651_v21  ;;  %v654_v26 = vld [vmem:[#allocation7 + $0x10] sm:$0xff]   ;;  %v656_v30 = vld [vmem:[#allocation7 + $0x18] sm:$0xff]   ;;  %p732_p10 = scmp.ne.s32.totalorder %s508_s13, %s731_s14  ;;  %p737_p12 = scmp.lt.s32.totalorder %s731_s14, %s731_s14 }
  0x41   :  { %v625_v24 = vld [vmem:[#allocation5 + $0x84] ss:$8 sps:$4 sm:$0xff]   ;;  %v627_v25 = vld [vmem:[#allocation5 + $0x80] ss:$8 sps:$4 sm:$0xff]   ;;  %v628_v28 = vld [vmem:[#allocation5 + $0x94] ss:$8 sps:$4 sm:$0xff]  }
  0x42   :  { %278 = vmatpush1.bf16.msra.mxu0 %v609_v5  ;;  %v630_v29 = vld [vmem:[#allocation5 + $0x90] ss:$8 sps:$4 sm:$0xff]   ;;  %v657_v31 = vld [vmem:[#allocation7 + $0x60] sm:$0xff]   ;;  %v659_v35 = vld [vmem:[#allocation7 + $0x68] sm:$0xff]   ;;  %p738_p13 = por %p737_p12, %p736_p11 }
  0x43   :  { %279 = vmatprep.subr.bf16.mxu0 %v610_v6  ;;  %572 = vmatpush3.bf16.msra.mxu1 %v652_v22  ;;  %v631_v32 = vld [vmem:[#allocation5 + $0xa4] ss:$8 sps:$4 sm:$0xff]   ;;  %v633_v34 = vld [vmem:[#allocation5 + $0xa0] ss:$8 sps:$4 sm:$0xff]   ;;  %v634_v36 = vld [vmem:[#allocation5 + $0xb4] ss:$8 sps:$4 sm:$0xff]  }
  0x44   :  { %573 = vmatprep.subr.bf16.mxu1 %v653_v23  ;;  %v658_v33 = vld [vmem:[#allocation7 + $0x20] sm:$0xff]   ;;  %v636_v37 = vld [vmem:[#allocation5 + $0xb0] ss:$8 sps:$4 sm:$0xff]   ;;  %v640_v40 = vld [vmem:[#allocation5 + $0xd4] ss:$8 sps:$4 sm:$0xff]   ;;  %p739_p0 = pnand %p738_p13, %p732_p10 }
  0x45   :  { %v637_v38 = vld [vmem:[#allocation5 + $0xc4] ss:$8 sps:$4 sm:$0xff]   ;;  %v639_v39 = vld [vmem:[#allocation5 + $0xc0] ss:$8 sps:$4 sm:$0xff]   ;;  %v642_v41 = vld [vmem:[#allocation5 + $0xd0] ss:$8 sps:$4 sm:$0xff]  }
  0x46   :  { %280 = vmatpush1.bf16.msra.mxu0 %v612_v7  ;;  %v643_v42 = vld [vmem:[#allocation5 + $0xe4] ss:$8 sps:$4 sm:$0xff]   ;;  %v645_v43 = vld [vmem:[#allocation5 + $0xe0] ss:$8 sps:$4 sm:$0xff]   ;;  %v646_v44 = vld [vmem:[#allocation5 + $0xf4] ss:$8 sps:$4 sm:$0xff]  }
  0x47   :  { %281 = vmatprep.subr.bf16.mxu0 %v613_v8  ;;  %574 = vmatpush3.bf16.msra.mxu1 %v654_v26  ;;  %v648_v45 = vld [vmem:[#allocation5 + $0xf0] ss:$8 sps:$4 sm:$0xff]   ;;  %v63_v46 = vld [vmem:[#allocation2] sm:$0xff]  ;;  %v660_v49 = vld [vmem:[#allocation7 + $0x28] sm:$0xff]  }
  0x48   :  { %575 = vmatprep.subr.bf16.mxu1 %v655_v27  ;;  %v65_v47 = vld [vmem:[#allocation2 + $0x10] sm:$0xff]  ;;  %v663_v52 = vld [vmem:[#allocation7 + $0x78] sm:$0xff]   ;;  %v101_v57 = vld [vmem:[%s861_s2] sm:$0x3] }
  0x49   :  { %v67_v48 = vpack.c.bf16 %v65_v47, %v63_v46  ;;  %v661_v50 = vld [vmem:[#allocation7 + $0x70] sm:$0xff]   ;;  %v664_v53 = vld [vmem:[#allocation7 + $0x38] sm:$0xff]   ;;  %v106_v59 = vrot.slane %v101_v57, %v105_v56  ;;  %v110_v60 = vrot.slane %v101_v57, %v109_v58 }
  0x4a   :  { %282 = vmatpush1.bf16.msra.mxu0 %v615_v9  ;;  %v662_v51 = vld [vmem:[#allocation7 + $0x30] sm:$0xff]  }
  0x4b   :  { %283 = vmatprep.subr.bf16.mxu0 %v616_v10  ;;  %576 = vmatpush3.bf16.msra.mxu1 %v656_v30 }
  0x4c   :  { %577 = vmatprep.subr.bf16.mxu1 %v657_v31 }
  0x4e   :  { %284 = vmatpush1.bf16.msra.mxu0 %v618_v11 }
  0x4f   :  { %285 = vmatprep.subr.bf16.mxu0 %v619_v12  ;;  %578 = vmatpush3.bf16.msra.mxu1 %v658_v33  ;;  %v552_v12 = vld [vmem:[%s863_s4] ss:$0 sm:$0xff] }
  0x50   :  { %579 = vmatprep.subr.bf16.mxu1 %v659_v35 }
  0x52   :  { %286 = vmatpush1.bf16.msra.mxu0 %v621_v15 }
  0x53   :  { %287 = vmatprep.subr.bf16.mxu0 %v622_v16  ;;  %580 = vmatpush3.bf16.msra.mxu1 %v660_v49 }
  0x54   :  { %581 = vmatprep.subr.bf16.mxu1 %v661_v50 }
  0x56   :  { %288 = vmatpush1.bf16.msra.mxu0 %v624_v20 }
  0x57   :  { %289 = vmatprep.subr.bf16.mxu0 %v625_v24  ;;  %582 = vmatpush3.bf16.msra.mxu1 %v662_v51 }
  0x58   :  { %583 = vmatprep.subr.bf16.mxu1 %v663_v52 }
  0x5a   :  { %290 = vmatpush1.bf16.msra.mxu0 %v627_v25 }
  0x5b   :  { %291 = vmatprep.subr.bf16.mxu0 %v628_v28  ;;  %584 = vmatpush3.bf16.msra.mxu1 %v664_v53 }
  0x5e   :  { %292 = vmatpush1.bf16.msra.mxu0 %v630_v29 }
  0x5f   :  { %293 = vmatprep.subr.bf16.mxu0 %v631_v32 }
  0x62   :  { %294 = vmatpush1.bf16.msra.mxu0 %v633_v34 }
  0x63   :  { %295 = vmatprep.subr.bf16.mxu0 %v634_v36 }
  0x66   :  { %296 = vmatpush1.bf16.msra.mxu0 %v636_v37 }
  0x67   :  { %297 = vmatprep.subr.bf16.mxu0 %v637_v38 }
  0x6a   :  { %298 = vmatpush1.bf16.msra.mxu0 %v639_v39 }
  0x6b   :  { %299 = vmatprep.subr.bf16.mxu0 %v640_v40 }
  0x6e   :  { %300 = vmatpush1.bf16.msra.mxu0 %v642_v41 }
  0x6f   :  { %301 = vmatprep.subr.bf16.mxu0 %v643_v42 }
  0x72   :  { %302 = vmatpush1.bf16.msra.mxu0 %v645_v43 }
  0x73   :  { %303 = vmatprep.subr.bf16.mxu0 %v646_v44 }
  0x76   :  { %304 = vmatpush1.bf16.msra.mxu0 %v648_v45 }
  0x79   :  { %306 = vmatmul.mubr.bf16.vlgmr.msra.gmra.mrb[0].mxu0 %v67_v48 }
 0x14c   :  { %v307_v61 = vpop.f32.mrb[0].mxu0 }
 0x14d   :  { %v308_v62 = vadd.f32 %v307_v61, %v106_v59  ;;  %v309_v63 = vpop.f32.mrb[1].mxu0 }
 0x14e   :  { %v310_v0 = vadd.f32 %v309_v63, %v110_v60  ;;  %v311_v1 = vpop.f32.mrb[2].mxu0 }
 0x14f   :  { %v312_v2 = vadd.f32 %v311_v1, %v106_v59  ;;  %v313_v3 = vpop.f32.mrb[3].mxu0  ;;  %v316_v5 = vmax.f32 %v308_v62, 0.0 }
 0x150   :  { %v314_v4 = vadd.f32 %v313_v3, %v110_v60  ;;  %v317_v7 = vmax.f32 %v310_v0, 0.0 }
 0x151   :  { %v318_v6 = vmax.f32 %v312_v2, 0.0 }
 0x152   :  { %v319_v8 = vmax.f32 %v314_v4, 0.0 }
 0x153   :  { %v320_v9 = vpack.c.bf16 %v318_v6, %v316_v5 }
 0x154   :  { %v321_v10 = vpack.c.bf16 %v319_v8, %v317_v7 }
 0x156   :  { %489 = vmatprep.mubr.bf16.mxu1 %v321_v10 }
 0x157   :  { %490 = vmatmul.mubr.bf16.vlgmr.msra.gmra.mrb[0].mxu1 %v320_v9 }
 0x22a   :  { %v585_v11 = vpop.f32.mrb[0].mxu1 }
 0x22b   :  { %v586_v13 = vpop.f32.mrb[1].mxu1 }
 0x22c   :  { %v587_v14 = vadd.f32 %v586_v13, %v585_v11  ;;  %v588_v15 = vpop.f32.mrb[2].mxu1 }
 0x22d   :  { %v589_v16 = vpop.f32.mrb[3].mxu1 }
 0x22e   :  { %v492_v17 = vadd.f32 %v587_v14, %v552_v12  ;;  %v590_v18 = vadd.f32 %v589_v16, %v588_v15 }
 0x230   :  { %v498_v19 = vmax.f32 %v492_v17, 0.0  ;;  %v495_v20 = vadd.f32 %v590_v18, %v552_v12 }
 0x232   :  { %500 = vst [vmem:[#allocation8] sm:$0xff] %v498_v19  ;;  %v499_v21 = vmax.f32 %v495_v20, 0.0 }
 0x234   :  { %501 = vst [vmem:[#allocation8 + $0x8] sm:$0xff] %v499_v21 }
 0x235   :  { %742 = shalt.err (!%p739_p0)
}
 0x236   :  { %s743_s16 = scalar_lea.hbm %s864_s5, 256 }
 0x237   :  { %p744_p1 = scmp.ne.s32.totalorder %s864_s5, %s743_s16  ;;  %p747_p2 = scmp.lt.u32.totalorder %s743_s16, %s864_s5 }
 0x239   :  { %p749_p3 = pnand %p747_p2, %p744_p1 }
 0x23b   :  { %752 = shalt.err (!%p749_p3)
}
 0x23c   :  { %513 = dma.vmem_to_hbm [thread:$0]  %s508_s13, 256, %s864_s5, [#allocation4], %s760_s28, %s760_s28, %s761_s29  }
 0x23d   :  { %757 = dma.done.wait [#allocation4], 256  }
 0x23e   :  { %758 = vsyncadd [#allocation4], 4294967040 }
 0x23f   :  { %517 = vsyncpa [#allocation3], 1 }
 0x240   :  { %518 = vsyncpa [#allocation6], 1 }
 0x241   :  { %519 = vsyncpa [#allocation4], 1 }

</bundles_post_ra>
